<compile_context>
chip_gen: v7x
topology: tpu7x:2x2x1
jax: 0.10.0
libtpu: 0.0.40
codegen_flags: <defaults>
</compile_context>

<pallas_src>
import functools

import jax
import jax.numpy as jnp
from jax.experimental import pallas as pl
from jax.experimental.pallas import tpu as pltpu

# TODO(synk): only mode='nearest' with a positive integer scale_factor is
# implemented; 'bilinear'/'bicubic' and fractional scales are not translated.
# TODO(synk): when S*W is not a multiple of 128 the output stores are masked
# (partial-lane vst); packing several image rows per lane row would require a
# lane interleave (gather / large dup-matrix), which costs more than the
# masked stores save, so it is intentionally not done here.


def _dup_matrix(width, scale, dtype):
    """(W, S*W) 0/1 matrix: dup[w, q] = 1 iff q // S == w."""
    q = jnp.arange(scale * width, dtype=jnp.int32)
    w = jnp.arange(width, dtype=jnp.int32)
    return (q[None, :] // scale == w[:, None]).astype(dtype)


def _upsample_kernel(x_ref, dup_ref, o_ref, *, scale, acc_dtype):
    # x_ref:   (TM, W)        input rows
    # dup_ref: (W, S*W)       constant width-duplication matrix (VMEM resident)
    # o_ref:   (TM, S, S*W)   S identical widened rows per input row
    y = jnp.dot(x_ref[...], dup_ref[...], preferred_element_type=acc_dtype)
    y = y.astype(o_ref.dtype)
    for s in range(scale):          # static, tiny (S copies along H)
        o_ref[:, s, :] = y


def upsample_nearest(x, scale_factor=2.0):
    """Nearest-neighbor upsample of an NCHW tensor by an integer factor."""
    S = int(scale_factor)
    assert float(S) == float(scale_factor) and S >= 1, \
        "only positive integer scale factors are supported"
    B, C, H, W = x.shape
    if S == 1:
        return x

    N = B * C * H                                  # total input rows
    itemsize = jnp.dtype(x.dtype).itemsize
    out_row_bytes = S * S * W * itemsize

    # Row-tile size: ~2 MiB output tile per pipeline buffer, multiple of 8,
    # capped at 512 rows (measured sweet spot).  Conservative for all of
    # v5e/v6e (128 MiB VMEM) and v7x (64 MiB physical / 32 MiB scoped VMEM).
    tm = max(8, min(512, (2 * 1024 * 1024) // max(out_row_bytes, 1)))
    tm = (tm // 8) * 8
    if tm >= N:
        tm = N
    grid = (pl.cdiv(N, tm),)

    x2 = x.reshape(N, W)                           # free row-major reshape
    dup = _dup_matrix(W, S, x.dtype)
    acc_dtype = jnp.bfloat16 if x.dtype == jnp.bfloat16 else jnp.float32

    in_bytes = N * W * itemsize + W * S * W * itemsize
    out_bytes = N * S * S * W * itemsize
    cost = pl.CostEstimate(
        flops=2 * N * W * S * W,
        transcendentals=0,
        bytes_accessed=in_bytes + out_bytes,
    )

    out3 = pl.pallas_call(
        functools.partial(_upsample_kernel, scale=S, acc_dtype=acc_dtype),
        out_shape=jax.ShapeDtypeStruct((N, S, S * W), x.dtype),
        grid=grid,
        in_specs=[
            pl.BlockSpec((tm, W), lambda i: (i, 0)),       # pipelined row tile
            pl.BlockSpec((W, S * W), lambda i: (0, 0)),    # constant; DMA'd once
        ],
        out_specs=pl.BlockSpec((tm, S, S * W), lambda i: (i, 0, 0)),
        compiler_params=pltpu.CompilerParams(
            dimension_semantics=("parallel",),
            vmem_limit_bytes=32 * 1024 * 1024,
        ),
        cost_estimate=cost,
    )(x2, dup)

    return out3.reshape(B, C, S * H, S * W)        # free row-major reshape


if __name__ == "__main__":
    key = jax.random.PRNGKey(0)
    x = jax.random.normal(key, (2, 4, 16, 16), jnp.float32)

    out = jax.block_until_ready(upsample_nearest(x, scale_factor=2.0))

    # pure-JAX reference: F.interpolate(..., scale_factor=2, mode='nearest')
    ref = jnp.repeat(jnp.repeat(x, 2, axis=2), 2, axis=3)

    assert out.shape == (2, 4, 32, 32), out.shape
    err = float(jnp.max(jnp.abs(out - ref)))
    assert err < 1e-6, f"max abs err {err}"
    print("KERNEL_OK")
</pallas_src>

<mosaic_0001>
module attributes {stable_mosaic.version = 11 : i64} {
  func.func @_upsample_kernel(%arg0: i32, %arg1: memref<128x16xf32, #tpu.memory_space<vmem>>, %arg2: memref<16x32xf32, #tpu.memory_space<vmem>>, %arg3: memref<128x2x32xf32, #tpu.memory_space<vmem>>) attributes {dimension_semantics = [#tpu.dimension_semantics<parallel>], iteration_bounds = array<i64: 1>, scalar_prefetch = 0 : i64, scratch_operands = 0 : i64, tpu.core_type = #tpu.core_type<tc>, window_params = [{transform_indices = @transform_0, window_bounds = array<i64: 128, 16>}, {pipeline_mode = #tpu.pipeline_mode<synchronous>, transform_indices = @transform_1, window_bounds = array<i64: 16, 32>}, {transform_indices = @transform_2, window_bounds = array<i64: 128, 2, 32>}]} {
    %c0 = arith.constant 0 : index
    %c0_0 = arith.constant 0 : index
    %0 = vector.load %arg1[%c0, %c0_0] : memref<128x16xf32, #tpu.memory_space<vmem>>, vector<128x16xf32>
    %c0_1 = arith.constant 0 : index
    %c0_2 = arith.constant 0 : index
    %1 = vector.load %arg2[%c0_1, %c0_2] : memref<16x32xf32, #tpu.memory_space<vmem>>, vector<16x32xf32>
    %cst = arith.constant dense<0.000000e+00> : vector<128x32xf32>
    %2 = tpu.matmul %0, %1, %cst {dimension_numbers = #tpu.dot_dimension_numbers<[1], [0], [0], [1], [0, 0, 1, 1], [], []>} : vector<128x16xf32>, vector<16x32xf32>, vector<128x32xf32> -> vector<128x32xf32>
    %c0_3 = arith.constant 0 : index
    %c0_4 = arith.constant 0 : index
    %c0_5 = arith.constant 0 : index
    %3 = vector.load %arg3[%c0_3, %c0_4, %c0_5] : memref<128x2x32xf32, #tpu.memory_space<vmem>>, vector<128x1x32xf32>
    %4 = vector.shape_cast %3 : vector<128x1x32xf32> to vector<128x32xf32>
    %5 = vector.shape_cast %2 : vector<128x32xf32> to vector<128x1x32xf32>
    tpu.vector_store %arg3[%c0_3, %c0_4, %c0_5], %5 {strides = array<i32>} : memref<128x2x32xf32, #tpu.memory_space<vmem>>, vector<128x1x32xf32>,
    %c0_6 = arith.constant 0 : index
    %c1 = arith.constant 1 : index
    %c0_7 = arith.constant 0 : index
    %6 = vector.load %arg3[%c0_6, %c1, %c0_7] : memref<128x2x32xf32, #tpu.memory_space<vmem>>, vector<128x1x32xf32>
    %7 = vector.shape_cast %6 : vector<128x1x32xf32> to vector<128x32xf32>
    %8 = vector.shape_cast %2 : vector<128x32xf32> to vector<128x1x32xf32>
    tpu.vector_store %arg3[%c0_6, %c1, %c0_7], %8 {strides = array<i32>} : memref<128x2x32xf32, #tpu.memory_space<vmem>>, vector<128x1x32xf32>,
    return
  }
  func.func @transform_0(%arg0: i32) -> (i32, i32) {
    %c0_i32 = arith.constant 0 : i32
    %c0_i32_0 = arith.constant 0 : i32
    return %arg0, %c0_i32 : i32, i32
  }
  func.func @transform_1(%arg0: i32) -> (i32, i32) {
    %c0_i32 = arith.constant 0 : i32
    %c0_i32_0 = arith.constant 0 : i32
    %c0_i32_1 = arith.constant 0 : i32
    return %c0_i32, %c0_i32_0 : i32, i32
  }
  func.func @transform_2(%arg0: i32) -> (i32, i32, i32) {
    %c0_i32 = arith.constant 0 : i32
    %c0_i32_0 = arith.constant 0 : i32
    %c0_i32_1 = arith.constant 0 : i32
    return %arg0, %c0_i32, %c0_i32_0 : i32, i32, i32
  }
}

</mosaic_0001>

<bundles_post_ra>
// kernel: tpu_custom_call.1
= control target key start
LH: loop header
LB: loop body
LE: loop exit
PB: predicated region body
PF: predicated region fallthrough
CT: control target
= control target key end

     0   :  { %vm29_vm0 = vcmask 130048   ;;  %v1481_v19 = vmov 1966171168   ;;  %v243_v21 = vlaneseq  ;;  %vm1151_vm1 = vcmask 253952   ;;  %s2762_s1 = inlined_call_operand.vmem [shape: f32[16,32], index: 1, kind: input, shape index: {}]   ;;  %s2763_s0 = inlined_call_operand.vmem [shape: f32[128,16], index: 0, kind: input, shape index: {}]   ;;  %s2764_s2 = inlined_call_operand.vmem [shape: f32[128,2,32], index: 2, kind: output, shape index: {}]  }
   0x1   :  { %v27_v0 = vld [vmem:[%s2762_s1] sm:$0xff]  ;;  %v28_v1 = vld [vmem:[%s2762_s1 + $0x8] sm:$0xff]  ;;  %v13_v7 = vld [vmem:[%s2763_s0 + $0x10] sm:$0xff]  ;;  %v241_v20 = vunpack.c.l.s4 %v1481_v19 }
   0x2   :  { %v11_v2 = vld [vmem:[%s2763_s0] sm:$0xff]  ;;  %v1474_v3 = vpack.c.bf16 %v28_v1, %v27_v0  ;;  %v12_v5 = vld [vmem:[%s2763_s0 + $0x8] sm:$0xff]  ;;  %v21_v8 = vld [vmem:[%s2763_s0 + $0x50] sm:$0xff]  ;;  %v244_v23 = vshrl.u32 %v243_v21, 7 }
   0x3   :  { %1450 = vmatprep.mubr.msk.f32.mxu0 %vm29_vm0, %v11_v2  ;;  %v19_v4 = vld [vmem:[%s2763_s0 + $0x40] sm:$0xff]  ;;  %v20_v6 = vld [vmem:[%s2763_s0 + $0x48] sm:$0xff]  ;;  %v14_v9 = vld [vmem:[%s2763_s0 + $0x18] sm:$0xff]  ;;  %v242_v22 = vunpack.c.0.s8 %v241_v20 }
   0x4   :  { %1462 = vmatprep.mubr.msk.f32.mxu1 %vm29_vm0, %v19_v4  ;;  %1475 = vmatprep.subr.bf16.mxu0 %v1474_v3  ;;  %v22_v10 = vld [vmem:[%s2763_s0 + $0x58] sm:$0xff]  ;;  %v15_v11 = vld [vmem:[%s2763_s0 + $0x20] sm:$0xff]  ;;  %v16_v13 = vld [vmem:[%s2763_s0 + $0x28] sm:$0xff] }
   0x5   :  { %1478 = vmatprep.subr.bf16.mxu1 %v1474_v3  ;;  %1477 = vmatpush3.bf16.msra.mxu0 %v1474_v3  ;;  %v23_v12 = vld [vmem:[%s2763_s0 + $0x60] sm:$0xff]  ;;  %v24_v14 = vld [vmem:[%s2763_s0 + $0x68] sm:$0xff]  ;;  %v17_v15 = vld [vmem:[%s2763_s0 + $0x30] sm:$0xff]  ;;  %v1567_v24 = vsub.s32 %v242_v22, %v244_v23 }
   0x6   :  { %1479 = vmatpush3.bf16.msra.mxu1 %v1474_v3  ;;  %v25_v16 = vld [vmem:[%s2763_s0 + $0x70] sm:$0xff]  ;;  %v18_v17 = vld [vmem:[%s2763_s0 + $0x38] sm:$0xff] }
   0x7   :  { %v26_v18 = vld [vmem:[%s2763_s0 + $0x78] sm:$0xff] }
   0x8   :  { %1451 = vmatmul.mubr.msk.f32.vlgmr.msra.gmra.mrb[0].mxu0 %vm29_vm0, %v12_v5 }
   0x9   :  { %1463 = vmatmul.mubr.msk.f32.vlgmr.msra.gmra.mrb[0].mxu1 %vm29_vm0, %v20_v6  ;;  %1453 = vmatprep.mubr.msk.f32.mxu0 %vm29_vm0, %v13_v7 }
   0xa   :  { %1465 = vmatprep.mubr.msk.f32.mxu1 %vm29_vm0, %v21_v8 }
   0xc   :  { %1454 = vmatmul.mubr.msk.f32.gmra.mrb[2].mxu0 %vm29_vm0, %v14_v9 }
   0xd   :  { %1466 = vmatmul.mubr.msk.f32.gmra.mrb[2].mxu1 %vm29_vm0, %v22_v10  ;;  %1456 = vmatprep.mubr.msk.f32.mxu0 %vm29_vm0, %v15_v11 }
   0xe   :  { %1468 = vmatprep.mubr.msk.f32.mxu1 %vm29_vm0, %v23_v12 }
  0x10   :  { %1457 = vmatmul.mubr.msk.f32.gmra.mrb[4].mxu0 %vm29_vm0, %v16_v13 }
  0x11   :  { %1469 = vmatmul.mubr.msk.f32.gmra.mrb[4].mxu1 %vm29_vm0, %v24_v14  ;;  %1459 = vmatprep.mubr.msk.f32.mxu0 %vm29_vm0, %v17_v15 }
  0x12   :  { %1471 = vmatprep.mubr.msk.f32.mxu1 %vm29_vm0, %v25_v16 }
  0x14   :  { %1460 = vmatmul.mubr.msk.f32.gmra.mrb[6].mxu0 %vm29_vm0, %v18_v17 }
  0x15   :  { %1472 = vmatmul.mubr.msk.f32.gmra.mrb[6].mxu1 %vm29_vm0, %v26_v18 }
  0xdb   :  { %v1452_v25 = vpop.f32.mrb[0].mxu0 }
  0xdc   :  { %v1464_v26 = vpop.f32.mrb[0].mxu1  ;;  %v288_v27 = vcombine.high %v1452_v25, %v1452_v25  ;;  %v295_v28 = vrot.slane %v1452_v25, %v1567_v24  ;;  %v144_v31 = vpop.f32.mrb[1].mxu0 }
  0xdd   :  { %v680_v29 = vcombine.high %v1464_v26, %v1464_v26  ;;  %v687_v30 = vrot.slane %v1464_v26, %v1567_v24  ;;  %v1571_v32 = vpop.f32.mrb[1].mxu1  ;;  %v239_v33 = vcombine.high %v144_v31, %v144_v31  ;;  %v246_v34 = vrot.slane %v144_v31, %v1567_v24 }
  0xde   :  { %v631_v35 = vcombine.high %v1571_v32, %v1571_v32  ;;  %v1578_v36 = vrot.slane %v1571_v32, %v1567_v24  ;;  %v302_v37 = vrot.slane %v288_v27, %v1567_v24  ;;  %v303_v38 = vcombine.high %v295_v28, %v295_v28 }
  0xdf   :  { %v311_v39 = vrot.slane %v295_v28, %v1567_v24  ;;  %v694_v40 = vrot.slane %v680_v29, %v1567_v24  ;;  %v695_v41 = vcombine.high %v687_v30, %v687_v30  ;;  %v703_v42 = vrot.slane %v687_v30, %v1567_v24  ;;  %v1585_v45 = vpop.f32.mrb[2].mxu0 }
  0xe0   :  { %v253_v43 = vrot.slane %v239_v33, %v1567_v24  ;;  %v254_v44 = vcombine.high %v246_v34, %v246_v34  ;;  %v1587_v46 = vpop.f32.mrb[2].mxu1  ;;  %v304_v47 = vcombine.high %v302_v37, %v302_v37  ;;  %v318_v48 = vrot.slane %v302_v37, %v1567_v24  ;;  %v1599_v51 = vpop.f32.mrb[3].mxu0 }
  0xe1   :  { %v325_v49 = vrot.slane %v303_v38, %v1567_v24  ;;  %v333_v50 = vcombine.high %v311_v39, %v311_v39  ;;  %1160 = vst.msk [vmem:[%s2764_s2 + $0x10] sm:$0x1] %vm1151_vm1, %v311_v39  ;;  %1288 = vst.msk [vmem:[%s2764_s2 + $0x11] sm:$0x1] %vm1151_vm1, %v311_v39  ;;  %v1601_v52 = vpop.f32.mrb[3].mxu1  ;;  %v696_v53 = vcombine.high %v694_v40, %v694_v40 }
  0xe2   :  { %v710_v54 = vrot.slane %v694_v40, %v1567_v24  ;;  %v717_v55 = vrot.slane %v695_v41, %v1567_v24  ;;  %v725_v56 = vcombine.high %v703_v42, %v703_v42  ;;  %1224 = vst.msk [vmem:[%s2764_s2 + $0x90] sm:$0x1] %vm1151_vm1, %v703_v42  ;;  %1352 = vst.msk [vmem:[%s2764_s2 + $0x91] sm:$0x1] %vm1151_vm1, %v703_v42 }
  0xe3   :  { %v332_v57 = vrot.slane %v304_v47, %v1567_v24  ;;  %v334_v58 = vcombine.high %v318_v48, %v318_v48  ;;  %v335_v59 = vcombine.high %v325_v49, %v325_v49  ;;  %1161 = vst.msk [vmem:[%s2764_s2 + $0x12] sm:$0x1] %vm1151_vm1, %v325_v49  ;;  %1162 = vst.msk [vmem:[%s2764_s2 + $0x14] sm:$0x1] %vm1151_vm1, %v333_v50  ;;  %v1664_v1 = vpop.f32.mrb[4].mxu0 }
  0xe4   :  { %1164 = vst.msk [vmem:[%s2764_s2 + $0x18] sm:$0x1] %vm1151_vm1, %v318_v48  ;;  %1289 = vst.msk [vmem:[%s2764_s2 + $0x13] sm:$0x1] %vm1151_vm1, %v325_v49  ;;  %v255_v60 = vcombine.high %v253_v43, %v253_v43  ;;  %v724_v61 = vrot.slane %v696_v53, %v1567_v24  ;;  %v726_v62 = vcombine.high %v710_v54, %v710_v54  ;;  %v1666_v2 = vpop.f32.mrb[4].mxu1  ;;  %v1695_v7 = vpop.f32.mrb[5].mxu0 }
  0xe5   :  { %1290 = vst.msk [vmem:[%s2764_s2 + $0x15] sm:$0x1] %vm1151_vm1, %v333_v50  ;;  %1292 = vst.msk [vmem:[%s2764_s2 + $0x19] sm:$0x1] %vm1151_vm1, %v318_v48  ;;  %v727_v63 = vcombine.high %v717_v55, %v717_v55  ;;  %v262_v0 = vrot.slane %v246_v34, %v1567_v24  ;;  %v336_v3 = vcombine.high %v332_v57, %v332_v57  ;;  %v1697_v8 = vpop.f32.mrb[5].mxu1 }
  0xe6   :  { %1225 = vst.msk [vmem:[%s2764_s2 + $0x92] sm:$0x1] %vm1151_vm1, %v717_v55  ;;  %1226 = vst.msk [vmem:[%s2764_s2 + $0x94] sm:$0x1] %vm1151_vm1, %v725_v56  ;;  %v269_v4 = vrot.slane %v253_v43, %v1567_v24  ;;  %v276_v5 = vrot.slane %v254_v44, %v1567_v24  ;;  %v283_v6 = vrot.slane %v255_v60, %v1567_v24 }
  0xe7   :  { %1228 = vst.msk [vmem:[%s2764_s2 + $0x98] sm:$0x1] %vm1151_vm1, %v710_v54  ;;  %1353 = vst.msk [vmem:[%s2764_s2 + $0x93] sm:$0x1] %vm1151_vm1, %v717_v55  ;;  %v728_v9 = vcombine.high %v724_v61, %v724_v61  ;;  %v284_v10 = vcombine.high %v262_v0, %v262_v0  ;;  %v645_v11 = vrot.slane %v631_v35, %v1567_v24  ;;  %v1791_v21 = vpop.f32.mrb[6].mxu0 }
  0xe8   :  { %1354 = vst.msk [vmem:[%s2764_s2 + $0x95] sm:$0x1] %vm1151_vm1, %v725_v56  ;;  %1356 = vst.msk [vmem:[%s2764_s2 + $0x99] sm:$0x1] %vm1151_vm1, %v710_v54  ;;  %v646_v12 = vcombine.high %v1578_v36, %v1578_v36  ;;  %v285_v13 = vcombine.high %v269_v4, %v269_v4  ;;  %v286_v14 = vcombine.high %v276_v5, %v276_v5  ;;  %v1793_v22 = vpop.f32.mrb[6].mxu1  ;;  %v1833_v28 = vpop.f32.mrb[7].mxu0 }
  0xe9   :  { %1163 = vst.msk [vmem:[%s2764_s2 + $0x16] sm:$0x1] %vm1151_vm1, %v335_v59  ;;  %1165 = vst.msk [vmem:[%s2764_s2 + $0x1a] sm:$0x1] %vm1151_vm1, %v332_v57  ;;  %v287_v15 = vcombine.high %v283_v6, %v283_v6  ;;  %v654_v16 = vrot.slane %v1578_v36, %v1567_v24  ;;  %v647_v17 = vcombine.high %v645_v11, %v645_v11  ;;  %v1835_v29 = vpop.f32.mrb[7].mxu1 }
  0xea   :  { %1166 = vst.msk [vmem:[%s2764_s2 + $0x1c] sm:$0x1] %vm1151_vm1, %v334_v58  ;;  %1291 = vst.msk [vmem:[%s2764_s2 + $0x17] sm:$0x1] %vm1151_vm1, %v335_v59  ;;  %v661_v18 = vrot.slane %v645_v11, %v1567_v24  ;;  %v668_v19 = vrot.slane %v646_v12, %v1567_v24  ;;  %v386_v20 = vcombine.high %v1585_v45, %v1585_v45 }
  0xeb   :  { %1293 = vst.msk [vmem:[%s2764_s2 + $0x1b] sm:$0x1] %vm1151_vm1, %v332_v57  ;;  %1294 = vst.msk [vmem:[%s2764_s2 + $0x1d] sm:$0x1] %vm1151_vm1, %v334_v58  ;;  %v676_v23 = vcombine.high %v654_v16, %v654_v16  ;;  %v393_v25 = vrot.slane %v1585_v45, %v1567_v24  ;;  %v778_v26 = vcombine.high %v1587_v46, %v1587_v46 }
  0xec   :  { %1227 = vst.msk [vmem:[%s2764_s2 + $0x96] sm:$0x1] %vm1151_vm1, %v727_v63  ;;  %1229 = vst.msk [vmem:[%s2764_s2 + $0x9a] sm:$0x1] %vm1151_vm1, %v724_v61  ;;  %v785_v27 = vrot.slane %v1587_v46, %v1567_v24  ;;  %v675_v30 = vrot.slane %v647_v17, %v1567_v24  ;;  %v677_v31 = vcombine.high %v661_v18, %v661_v18 }
  0xed   :  { %1230 = vst.msk [vmem:[%s2764_s2 + $0x9c] sm:$0x1] %vm1151_vm1, %v726_v62  ;;  %1355 = vst.msk [vmem:[%s2764_s2 + $0x97] sm:$0x1] %vm1151_vm1, %v727_v63  ;;  %v678_v32 = vcombine.high %v668_v19, %v668_v19  ;;  %v400_v33 = vrot.slane %v386_v20, %v1567_v24  ;;  %v401_v34 = vcombine.high %v393_v25, %v393_v25 }
  0xee   :  { %1357 = vst.msk [vmem:[%s2764_s2 + $0x9b] sm:$0x1] %vm1151_vm1, %v724_v61  ;;  %1358 = vst.msk [vmem:[%s2764_s2 + $0x9d] sm:$0x1] %vm1151_vm1, %v726_v62  ;;  %v409_v35 = vrot.slane %v393_v25, %v1567_v24  ;;  %v792_v36 = vrot.slane %v778_v26, %v1567_v24  ;;  %v793_v37 = vcombine.high %v785_v27, %v785_v27 }
  0xef   :  { %1152 = vst.msk [vmem:[%s2764_s2] sm:$0x1] %vm1151_vm1, %v262_v0  ;;  %1280 = vst.msk [vmem:[%s2764_s2 + $0x1] sm:$0x1] %vm1151_vm1, %v262_v0  ;;  %v679_v38 = vcombine.high %v675_v30, %v675_v30  ;;  %v402_v39 = vcombine.high %v400_v33, %v400_v33  ;;  %v416_v40 = vrot.slane %v400_v33, %v1567_v24 }
  0xf0   :  { %1167 = vst.msk [vmem:[%s2764_s2 + $0x1e] sm:$0x1] %vm1151_vm1, %v336_v3  ;;  %1295 = vst.msk [vmem:[%s2764_s2 + $0x1f] sm:$0x1] %vm1151_vm1, %v336_v3  ;;  %v801_v41 = vrot.slane %v785_v27, %v1567_v24  ;;  %v423_v42 = vrot.slane %v401_v34, %v1567_v24  ;;  %v431_v43 = vcombine.high %v409_v35, %v409_v35 }
  0xf1   :  { %1153 = vst.msk [vmem:[%s2764_s2 + $0x2] sm:$0x1] %vm1151_vm1, %v276_v5  ;;  %1156 = vst.msk [vmem:[%s2764_s2 + $0x8] sm:$0x1] %vm1151_vm1, %v269_v4  ;;  %v794_v44 = vcombine.high %v792_v36, %v792_v36  ;;  %v808_v45 = vrot.slane %v792_v36, %v1567_v24  ;;  %v430_v46 = vrot.slane %v402_v39, %v1567_v24 }
  0xf2   :  { %1157 = vst.msk [vmem:[%s2764_s2 + $0xa] sm:$0x1] %vm1151_vm1, %v283_v6  ;;  %1281 = vst.msk [vmem:[%s2764_s2 + $0x3] sm:$0x1] %vm1151_vm1, %v276_v5  ;;  %v432_v47 = vcombine.high %v416_v40, %v416_v40  ;;  %v815_v48 = vrot.slane %v793_v37, %v1567_v24  ;;  %v823_v49 = vcombine.high %v801_v41, %v801_v41 }
  0xf3   :  { %1284 = vst.msk [vmem:[%s2764_s2 + $0x9] sm:$0x1] %vm1151_vm1, %v269_v4  ;;  %1285 = vst.msk [vmem:[%s2764_s2 + $0xb] sm:$0x1] %vm1151_vm1, %v283_v6  ;;  %v433_v50 = vcombine.high %v423_v42, %v423_v42  ;;  %v822_v53 = vrot.slane %v794_v44, %v1567_v24  ;;  %v824_v54 = vcombine.high %v808_v45, %v808_v45 }
  0xf4   :  { %1231 = vst.msk [vmem:[%s2764_s2 + $0x9e] sm:$0x1] %vm1151_vm1, %v728_v9  ;;  %1359 = vst.msk [vmem:[%s2764_s2 + $0x9f] sm:$0x1] %vm1151_vm1, %v728_v9  ;;  %v337_v55 = vcombine.high %v1599_v51, %v1599_v51  ;;  %v434_v56 = vcombine.high %v430_v46, %v430_v46  ;;  %v825_v57 = vcombine.high %v815_v48, %v815_v48 }
  0xf5   :  { %1154 = vst.msk [vmem:[%s2764_s2 + $0x4] sm:$0x1] %vm1151_vm1, %v284_v10  ;;  %1282 = vst.msk [vmem:[%s2764_s2 + $0x5] sm:$0x1] %vm1151_vm1, %v284_v10  ;;  %v344_v58 = vrot.slane %v1599_v51, %v1567_v24  ;;  %v729_v59 = vcombine.high %v1601_v52, %v1601_v52  ;;  %v826_v60 = vcombine.high %v822_v53, %v822_v53 }
  0xf6   :  { %1155 = vst.msk [vmem:[%s2764_s2 + $0x6] sm:$0x1] %vm1151_vm1, %v286_v14  ;;  %1158 = vst.msk [vmem:[%s2764_s2 + $0xc] sm:$0x1] %vm1151_vm1, %v285_v13  ;;  %v351_v51 = vrot.slane %v337_v55, %v1567_v24  ;;  %v736_v61 = vrot.slane %v1601_v52, %v1567_v24  ;;  %v484_v62 = vcombine.high %v1664_v1, %v1664_v1 }
  0xf7   :  { %1159 = vst.msk [vmem:[%s2764_s2 + $0xe] sm:$0x1] %vm1151_vm1, %v287_v15  ;;  %1283 = vst.msk [vmem:[%s2764_s2 + $0x7] sm:$0x1] %vm1151_vm1, %v286_v14  ;;  %v352_v52 = vcombine.high %v344_v58, %v344_v58  ;;  %v360_v63 = vrot.slane %v344_v58, %v1567_v24  ;;  %v743_v0 = vrot.slane %v729_v59, %v1567_v24 }
  0xf8   :  { %1286 = vst.msk [vmem:[%s2764_s2 + $0xd] sm:$0x1] %vm1151_vm1, %v285_v13  ;;  %1287 = vst.msk [vmem:[%s2764_s2 + $0xf] sm:$0x1] %vm1151_vm1, %v287_v15  ;;  %v491_v3 = vrot.slane %v1664_v1, %v1567_v24  ;;  %v353_v4 = vcombine.high %v351_v51, %v351_v51  ;;  %v367_v5 = vrot.slane %v351_v51, %v1567_v24 }
  0xf9   :  { %1216 = vst.msk [vmem:[%s2764_s2 + $0x80] sm:$0x1] %vm1151_vm1, %v654_v16  ;;  %1344 = vst.msk [vmem:[%s2764_s2 + $0x81] sm:$0x1] %vm1151_vm1, %v654_v16  ;;  %v744_v6 = vcombine.high %v736_v61, %v736_v61  ;;  %v752_v9 = vrot.slane %v736_v61, %v1567_v24  ;;  %v374_v10 = vrot.slane %v352_v52, %v1567_v24 }
  0xfa   :  { %1217 = vst.msk [vmem:[%s2764_s2 + $0x82] sm:$0x1] %vm1151_vm1, %v668_v19  ;;  %1220 = vst.msk [vmem:[%s2764_s2 + $0x88] sm:$0x1] %vm1151_vm1, %v661_v18  ;;  %v382_v11 = vcombine.high %v360_v63, %v360_v63  ;;  %v745_v1 = vcombine.high %v743_v0, %v743_v0  ;;  %v759_v12 = vrot.slane %v743_v0, %v1567_v24 }
  0xfb   :  { %1345 = vst.msk [vmem:[%s2764_s2 + $0x83] sm:$0x1] %vm1151_vm1, %v668_v19  ;;  %1348 = vst.msk [vmem:[%s2764_s2 + $0x89] sm:$0x1] %vm1151_vm1, %v661_v18  ;;  %v381_v13 = vrot.slane %v353_v4, %v1567_v24  ;;  %v383_v14 = vcombine.high %v367_v5, %v367_v5  ;;  %v766_v15 = vrot.slane %v744_v6, %v1567_v24 }
  0xfc   :  { %1218 = vst.msk [vmem:[%s2764_s2 + $0x84] sm:$0x1] %vm1151_vm1, %v676_v23  ;;  %1346 = vst.msk [vmem:[%s2764_s2 + $0x85] sm:$0x1] %vm1151_vm1, %v676_v23  ;;  %v774_v16 = vcombine.high %v752_v9, %v752_v9  ;;  %v384_v17 = vcombine.high %v374_v10, %v374_v10  ;;  %v773_v18 = vrot.slane %v745_v1, %v1567_v24 }
  0xfd   :  { %1219 = vst.msk [vmem:[%s2764_s2 + $0x86] sm:$0x1] %vm1151_vm1, %v678_v32  ;;  %1221 = vst.msk [vmem:[%s2764_s2 + $0x8a] sm:$0x1] %vm1151_vm1, %v675_v30  ;;  %v775_v19 = vcombine.high %v759_v12, %v759_v12  ;;  %v498_v20 = vrot.slane %v484_v62, %v1567_v24  ;;  %v385_v23 = vcombine.high %v381_v13, %v381_v13 }
  0xfe   :  { %1222 = vst.msk [vmem:[%s2764_s2 + $0x8c] sm:$0x1] %vm1151_vm1, %v677_v31  ;;  %1347 = vst.msk [vmem:[%s2764_s2 + $0x87] sm:$0x1] %vm1151_vm1, %v678_v32  ;;  %v776_v25 = vcombine.high %v766_v15, %v766_v15  ;;  %v499_v26 = vcombine.high %v491_v3, %v491_v3  ;;  %v507_v27 = vrot.slane %v491_v3, %v1567_v24 }
  0xff   :  { %1349 = vst.msk [vmem:[%s2764_s2 + $0x8b] sm:$0x1] %vm1151_vm1, %v675_v30  ;;  %1350 = vst.msk [vmem:[%s2764_s2 + $0x8d] sm:$0x1] %vm1151_vm1, %v677_v31  ;;  %v777_v30 = vcombine.high %v773_v18, %v773_v18  ;;  %v500_v31 = vcombine.high %v498_v20, %v498_v20  ;;  %v514_v32 = vrot.slane %v498_v20, %v1567_v24 }
 0x100   :  { %1176 = vst.msk [vmem:[%s2764_s2 + $0x30] sm:$0x1] %vm1151_vm1, %v409_v35  ;;  %1304 = vst.msk [vmem:[%s2764_s2 + $0x31] sm:$0x1] %vm1151_vm1, %v409_v35  ;;  %v876_v33 = vcombine.high %v1666_v2, %v1666_v2  ;;  %v521_v34 = vrot.slane %v499_v26, %v1567_v24  ;;  %v529_v35 = vcombine.high %v507_v27, %v507_v27 }
 0x101   :  { %1223 = vst.msk [vmem:[%s2764_s2 + $0x8e] sm:$0x1] %vm1151_vm1, %v679_v38  ;;  %1351 = vst.msk [vmem:[%s2764_s2 + $0x8f] sm:$0x1] %vm1151_vm1, %v679_v38  ;;  %v883_v36 = vrot.slane %v1666_v2, %v1567_v24  ;;  %v435_v37 = vcombine.high %v1695_v7, %v1695_v7  ;;  %v528_v38 = vrot.slane %v500_v31, %v1567_v24 }
 0x102   :  { %1180 = vst.msk [vmem:[%s2764_s2 + $0x38] sm:$0x1] %vm1151_vm1, %v416_v40  ;;  %1308 = vst.msk [vmem:[%s2764_s2 + $0x39] sm:$0x1] %vm1151_vm1, %v416_v40  ;;  %v530_v39 = vcombine.high %v514_v32, %v514_v32  ;;  %v890_v2 = vrot.slane %v876_v33, %v1567_v24  ;;  %v442_v40 = vrot.slane %v1695_v7, %v1567_v24 }
 0x103   :  { %1240 = vst.msk [vmem:[%s2764_s2 + $0xb0] sm:$0x1] %vm1151_vm1, %v801_v41  ;;  %1368 = vst.msk [vmem:[%s2764_s2 + $0xb1] sm:$0x1] %vm1151_vm1, %v801_v41  ;;  %v531_v41 = vcombine.high %v521_v34, %v521_v34  ;;  %v891_v7 = vcombine.high %v883_v36, %v883_v36  ;;  %v532_v44 = vcombine.high %v528_v38, %v528_v38 }
 0x104   :  { %1177 = vst.msk [vmem:[%s2764_s2 + $0x32] sm:$0x1] %vm1151_vm1, %v423_v42  ;;  %1178 = vst.msk [vmem:[%s2764_s2 + $0x34] sm:$0x1] %vm1151_vm1, %v431_v43  ;;  %v827_v51 = vcombine.high %v1697_v8, %v1697_v8  ;;  %v582_v3 = vcombine.high %v1791_v21, %v1791_v21  ;;  %v589_v4 = vrot.slane %v1791_v21, %v1567_v24 }
 0x105   :  { %1305 = vst.msk [vmem:[%s2764_s2 + $0x33] sm:$0x1] %vm1151_vm1, %v423_v42  ;;  %1306 = vst.msk [vmem:[%s2764_s2 + $0x35] sm:$0x1] %vm1151_vm1, %v431_v43  ;;  %v899_v42 = vrot.slane %v883_v36, %v1567_v24  ;;  %v449_v43 = vrot.slane %v435_v37, %v1567_v24  ;;  %v974_v6 = vcombine.high %v1793_v22, %v1793_v22 }
 0x106   :  { %1244 = vst.msk [vmem:[%s2764_s2 + $0xb8] sm:$0x1] %vm1151_vm1, %v808_v45  ;;  %1372 = vst.msk [vmem:[%s2764_s2 + $0xb9] sm:$0x1] %vm1151_vm1, %v808_v45  ;;  %v892_v45 = vcombine.high %v890_v2, %v890_v2  ;;  %v596_v1 = vrot.slane %v582_v3, %v1567_v24 }
 0x107   :  { %1181 = vst.msk [vmem:[%s2764_s2 + $0x3a] sm:$0x1] %vm1151_vm1, %v430_v46  ;;  %1182 = vst.msk [vmem:[%s2764_s2 + $0x3c] sm:$0x1] %vm1151_vm1, %v432_v47 }
 0x108   :  { %1309 = vst.msk [vmem:[%s2764_s2 + $0x3b] sm:$0x1] %vm1151_vm1, %v430_v46  ;;  %1310 = vst.msk [vmem:[%s2764_s2 + $0x3d] sm:$0x1] %vm1151_vm1, %v432_v47  ;;  %v906_v46 = vrot.slane %v890_v2, %v1567_v24  ;;  %v450_v47 = vcombine.high %v442_v40, %v442_v40  ;;  %v540_v2 = vrot.slane %v1833_v28, %v1567_v24 }
 0x109   :  { %1241 = vst.msk [vmem:[%s2764_s2 + $0xb2] sm:$0x1] %vm1151_vm1, %v815_v48  ;;  %1242 = vst.msk [vmem:[%s2764_s2 + $0xb4] sm:$0x1] %vm1151_vm1, %v823_v49 }
 0x10a   :  { %1369 = vst.msk [vmem:[%s2764_s2 + $0xb3] sm:$0x1] %vm1151_vm1, %v815_v48  ;;  %1370 = vst.msk [vmem:[%s2764_s2 + $0xb5] sm:$0x1] %vm1151_vm1, %v823_v49  ;;  %v913_v48 = vrot.slane %v891_v7, %v1567_v24  ;;  %v921_v49 = vcombine.high %v899_v42, %v899_v42  ;;  %v922_v55 = vcombine.high %v906_v46, %v906_v46 }
 0x10b   :  { %1179 = vst.msk [vmem:[%s2764_s2 + $0x36] sm:$0x1] %vm1151_vm1, %v433_v50  ;;  %1307 = vst.msk [vmem:[%s2764_s2 + $0x37] sm:$0x1] %vm1151_vm1, %v433_v50  ;;  %v451_v50 = vcombine.high %v449_v43, %v449_v43 }
 0x10c   :  { %1245 = vst.msk [vmem:[%s2764_s2 + $0xba] sm:$0x1] %vm1151_vm1, %v822_v53  ;;  %1246 = vst.msk [vmem:[%s2764_s2 + $0xbc] sm:$0x1] %vm1151_vm1, %v824_v54  ;;  %v923_v58 = vcombine.high %v913_v48, %v913_v48 }
 0x10d   :  { %1373 = vst.msk [vmem:[%s2764_s2 + $0xbb] sm:$0x1] %vm1151_vm1, %v822_v53  ;;  %1374 = vst.msk [vmem:[%s2764_s2 + $0xbd] sm:$0x1] %vm1151_vm1, %v824_v54  ;;  %v458_v53 = vrot.slane %v442_v40, %v1567_v24  ;;  %v920_v54 = vrot.slane %v892_v45, %v1567_v24  ;;  %v479_v59 = vrot.slane %v451_v50, %v1567_v24 }
 0x10e   :  { %1183 = vst.msk [vmem:[%s2764_s2 + $0x3e] sm:$0x1] %vm1151_vm1, %v434_v56  ;;  %1311 = vst.msk [vmem:[%s2764_s2 + $0x3f] sm:$0x1] %vm1151_vm1, %v434_v56  ;;  %v465_v56 = vrot.slane %v449_v43, %v1567_v24  ;;  %v556_v45 = vrot.slane %v540_v2, %v1567_v24 }
 0x10f   :  { %1243 = vst.msk [vmem:[%s2764_s2 + $0xb6] sm:$0x1] %vm1151_vm1, %v825_v57  ;;  %1371 = vst.msk [vmem:[%s2764_s2 + $0xb7] sm:$0x1] %vm1151_vm1, %v825_v57  ;;  %v472_v57 = vrot.slane %v450_v47, %v1567_v24  ;;  %v924_v61 = vcombine.high %v920_v54, %v920_v54  ;;  %v483_v0 = vcombine.high %v479_v59, %v479_v59 }
 0x110   :  { %1247 = vst.msk [vmem:[%s2764_s2 + $0xbe] sm:$0x1] %vm1151_vm1, %v826_v60  ;;  %1375 = vst.msk [vmem:[%s2764_s2 + $0xbf] sm:$0x1] %vm1151_vm1, %v826_v60  ;;  %v480_v60 = vcombine.high %v458_v53, %v458_v53  ;;  %v481_v62 = vcombine.high %v465_v56, %v465_v56 }
 0x111   :  { %1168 = vst.msk [vmem:[%s2764_s2 + $0x20] sm:$0x1] %vm1151_vm1, %v360_v63  ;;  %1296 = vst.msk [vmem:[%s2764_s2 + $0x21] sm:$0x1] %vm1151_vm1, %v360_v63  ;;  %v482_v52 = vcombine.high %v472_v57, %v472_v57  ;;  %v834_v63 = vrot.slane %v1697_v8, %v1567_v24  ;;  %v841_v8 = vrot.slane %v827_v51, %v1567_v24 }
 0x112   :  { %1172 = vst.msk [vmem:[%s2764_s2 + $0x28] sm:$0x1] %vm1151_vm1, %v367_v5  ;;  %1300 = vst.msk [vmem:[%s2764_s2 + $0x29] sm:$0x1] %vm1151_vm1, %v367_v5 }
 0x113   :  { %1232 = vst.msk [vmem:[%s2764_s2 + $0xa0] sm:$0x1] %vm1151_vm1, %v752_v9  ;;  %1360 = vst.msk [vmem:[%s2764_s2 + $0xa1] sm:$0x1] %vm1151_vm1, %v752_v9  ;;  %v842_v21 = vcombine.high %v834_v63, %v834_v63  ;;  %v850_v5 = vrot.slane %v834_v63, %v1567_v24  ;;  %v981_v9 = vrot.slane %v1793_v22, %v1567_v24 }
 0x114   :  { %1169 = vst.msk [vmem:[%s2764_s2 + $0x22] sm:$0x1] %vm1151_vm1, %v374_v10  ;;  %1170 = vst.msk [vmem:[%s2764_s2 + $0x24] sm:$0x1] %vm1151_vm1, %v382_v11  ;;  %v605_v22 = vrot.slane %v589_v4, %v1567_v24 }
 0x115   :  { %1297 = vst.msk [vmem:[%s2764_s2 + $0x23] sm:$0x1] %vm1151_vm1, %v374_v10  ;;  %1298 = vst.msk [vmem:[%s2764_s2 + $0x25] sm:$0x1] %vm1151_vm1, %v382_v11  ;;  %v843_v10 = vcombine.high %v841_v8, %v841_v8  ;;  %v857_v11 = vrot.slane %v841_v8, %v1567_v24  ;;  %v989_v26 = vcombine.high %v981_v9, %v981_v9 }
 0x116   :  { %1236 = vst.msk [vmem:[%s2764_s2 + $0xa8] sm:$0x1] %vm1151_vm1, %v759_v12  ;;  %1364 = vst.msk [vmem:[%s2764_s2 + $0xa9] sm:$0x1] %vm1151_vm1, %v759_v12  ;;  %v597_v12 = vcombine.high %v589_v4, %v589_v4 }
 0x117   :  { %1173 = vst.msk [vmem:[%s2764_s2 + $0x2a] sm:$0x1] %vm1151_vm1, %v381_v13  ;;  %1174 = vst.msk [vmem:[%s2764_s2 + $0x2c] sm:$0x1] %vm1151_vm1, %v383_v14  ;;  %v1011_v36 = vrot.slane %v989_v26, %v1567_v24 }
 0x118   :  { %1301 = vst.msk [vmem:[%s2764_s2 + $0x2b] sm:$0x1] %vm1151_vm1, %v381_v13  ;;  %1302 = vst.msk [vmem:[%s2764_s2 + $0x2d] sm:$0x1] %vm1151_vm1, %v383_v14  ;;  %v864_v13 = vrot.slane %v842_v21, %v1567_v24  ;;  %v872_v14 = vcombine.high %v850_v5, %v850_v5 }
 0x119   :  { %1233 = vst.msk [vmem:[%s2764_s2 + $0xa2] sm:$0x1] %vm1151_vm1, %v766_v15  ;;  %1234 = vst.msk [vmem:[%s2764_s2 + $0xa4] sm:$0x1] %vm1151_vm1, %v774_v16  ;;  %v1021_v7 = vcombine.high %v1011_v36, %v1011_v36 }
 0x11a   :  { %1361 = vst.msk [vmem:[%s2764_s2 + $0xa3] sm:$0x1] %vm1151_vm1, %v766_v15  ;;  %1362 = vst.msk [vmem:[%s2764_s2 + $0xa5] sm:$0x1] %vm1151_vm1, %v774_v16  ;;  %v988_v15 = vrot.slane %v974_v6, %v1567_v24  ;;  %v871_v16 = vrot.slane %v843_v10, %v1567_v24  ;;  %v874_v20 = vcombine.high %v864_v13, %v864_v13 }
 0x11b   :  { %1171 = vst.msk [vmem:[%s2764_s2 + $0x26] sm:$0x1] %vm1151_vm1, %v384_v17  ;;  %1299 = vst.msk [vmem:[%s2764_s2 + $0x27] sm:$0x1] %vm1151_vm1, %v384_v17  ;;  %v873_v17 = vcombine.high %v857_v11, %v857_v11 }
 0x11c   :  { %1237 = vst.msk [vmem:[%s2764_s2 + $0xaa] sm:$0x1] %vm1151_vm1, %v773_v18  ;;  %1238 = vst.msk [vmem:[%s2764_s2 + $0xac] sm:$0x1] %vm1151_vm1, %v775_v19 }
 0x11d   :  { %1365 = vst.msk [vmem:[%s2764_s2 + $0xab] sm:$0x1] %vm1151_vm1, %v773_v18  ;;  %1366 = vst.msk [vmem:[%s2764_s2 + $0xad] sm:$0x1] %vm1151_vm1, %v775_v19  ;;  %v598_v18 = vcombine.high %v596_v1, %v596_v1  ;;  %v612_v19 = vrot.slane %v596_v1, %v1567_v24 }
 0x11e   :  { %1175 = vst.msk [vmem:[%s2764_s2 + $0x2e] sm:$0x1] %vm1151_vm1, %v385_v23  ;;  %1303 = vst.msk [vmem:[%s2764_s2 + $0x2f] sm:$0x1] %vm1151_vm1, %v385_v23  ;;  %v619_v23 = vrot.slane %v597_v12, %v1567_v24 }
 0x11f   :  { %1235 = vst.msk [vmem:[%s2764_s2 + $0xa6] sm:$0x1] %vm1151_vm1, %v776_v25  ;;  %1363 = vst.msk [vmem:[%s2764_s2 + $0xa7] sm:$0x1] %vm1151_vm1, %v776_v25  ;;  %v627_v25 = vcombine.high %v605_v22, %v605_v22  ;;  %v628_v31 = vcombine.high %v612_v19, %v612_v19 }
 0x120   :  { %1192 = vst.msk [vmem:[%s2764_s2 + $0x50] sm:$0x1] %vm1151_vm1, %v507_v27  ;;  %1320 = vst.msk [vmem:[%s2764_s2 + $0x51] sm:$0x1] %vm1151_vm1, %v507_v27  ;;  %v875_v27 = vcombine.high %v871_v16, %v871_v16  ;;  %v629_v33 = vcombine.high %v619_v23, %v619_v23 }
 0x121   :  { %1239 = vst.msk [vmem:[%s2764_s2 + $0xae] sm:$0x1] %vm1151_vm1, %v777_v30  ;;  %1367 = vst.msk [vmem:[%s2764_s2 + $0xaf] sm:$0x1] %vm1151_vm1, %v777_v30  ;;  %v626_v30 = vrot.slane %v598_v18, %v1567_v24 }
 0x122   :  { %1196 = vst.msk [vmem:[%s2764_s2 + $0x58] sm:$0x1] %vm1151_vm1, %v514_v32  ;;  %1324 = vst.msk [vmem:[%s2764_s2 + $0x59] sm:$0x1] %vm1151_vm1, %v514_v32  ;;  %v990_v32 = vcombine.high %v988_v15, %v988_v15 }
 0x123   :  { %1193 = vst.msk [vmem:[%s2764_s2 + $0x52] sm:$0x1] %vm1151_vm1, %v521_v34  ;;  %1194 = vst.msk [vmem:[%s2764_s2 + $0x54] sm:$0x1] %vm1151_vm1, %v529_v35  ;;  %v630_v37 = vcombine.high %v626_v30, %v626_v30 }
 0x124   :  { %1321 = vst.msk [vmem:[%s2764_s2 + $0x53] sm:$0x1] %vm1151_vm1, %v521_v34  ;;  %1322 = vst.msk [vmem:[%s2764_s2 + $0x55] sm:$0x1] %vm1151_vm1, %v529_v35  ;;  %v997_v34 = vrot.slane %v981_v9, %v1567_v24  ;;  %v1004_v35 = vrot.slane %v988_v15, %v1567_v24 }
 0x125   :  { %1197 = vst.msk [vmem:[%s2764_s2 + $0x5a] sm:$0x1] %vm1151_vm1, %v528_v38  ;;  %1198 = vst.msk [vmem:[%s2764_s2 + $0x5c] sm:$0x1] %vm1151_vm1, %v530_v39 }
 0x126   :  { %1325 = vst.msk [vmem:[%s2764_s2 + $0x5b] sm:$0x1] %vm1151_vm1, %v528_v38  ;;  %1326 = vst.msk [vmem:[%s2764_s2 + $0x5d] sm:$0x1] %vm1151_vm1, %v530_v39  ;;  %v1018_v38 = vrot.slane %v990_v32, %v1567_v24  ;;  %v533_v39 = vcombine.high %v1833_v28, %v1833_v28  ;;  %v1019_v40 = vcombine.high %v997_v34, %v997_v34 }
 0x127   :  { %1195 = vst.msk [vmem:[%s2764_s2 + $0x56] sm:$0x1] %vm1151_vm1, %v531_v41  ;;  %1323 = vst.msk [vmem:[%s2764_s2 + $0x57] sm:$0x1] %vm1151_vm1, %v531_v41  ;;  %v1020_v41 = vcombine.high %v1004_v35, %v1004_v35  ;;  %v925_v28 = vcombine.high %v1835_v29, %v1835_v29 }
 0x128   :  { %1256 = vst.msk [vmem:[%s2764_s2 + $0xd0] sm:$0x1] %vm1151_vm1, %v899_v42  ;;  %1384 = vst.msk [vmem:[%s2764_s2 + $0xd1] sm:$0x1] %vm1151_vm1, %v899_v42  ;;  %v1022_v42 = vcombine.high %v1018_v38, %v1018_v38  ;;  %v547_v43 = vrot.slane %v533_v39, %v1567_v24 }
 0x129   :  { %1199 = vst.msk [vmem:[%s2764_s2 + $0x5e] sm:$0x1] %vm1151_vm1, %v532_v44  ;;  %1327 = vst.msk [vmem:[%s2764_s2 + $0x5f] sm:$0x1] %vm1151_vm1, %v532_v44  ;;  %v548_v44 = vcombine.high %v540_v2, %v540_v2  ;;  %v939_v47 = vrot.slane %v925_v28, %v1567_v24 }
 0x12a   :  { %1260 = vst.msk [vmem:[%s2764_s2 + $0xd8] sm:$0x1] %vm1151_vm1, %v906_v46  ;;  %1388 = vst.msk [vmem:[%s2764_s2 + $0xd9] sm:$0x1] %vm1151_vm1, %v906_v46  ;;  %v932_v46 = vrot.slane %v1835_v29, %v1567_v24 }
 0x12b   :  { %1257 = vst.msk [vmem:[%s2764_s2 + $0xd2] sm:$0x1] %vm1151_vm1, %v913_v48  ;;  %1258 = vst.msk [vmem:[%s2764_s2 + $0xd4] sm:$0x1] %vm1151_vm1, %v921_v49  ;;  %v570_v50 = vrot.slane %v548_v44, %v1567_v24 }
 0x12c   :  { %1385 = vst.msk [vmem:[%s2764_s2 + $0xd3] sm:$0x1] %vm1151_vm1, %v913_v48  ;;  %1386 = vst.msk [vmem:[%s2764_s2 + $0xd5] sm:$0x1] %vm1151_vm1, %v921_v49  ;;  %v549_v48 = vcombine.high %v547_v43, %v547_v43  ;;  %v563_v49 = vrot.slane %v547_v43, %v1567_v24  ;;  %v940_v29 = vcombine.high %v932_v46, %v932_v46 }
 0x12d   :  { %1184 = vst.msk [vmem:[%s2764_s2 + $0x40] sm:$0x1] %vm1151_vm1, %v458_v53  ;;  %1312 = vst.msk [vmem:[%s2764_s2 + $0x41] sm:$0x1] %vm1151_vm1, %v458_v53  ;;  %v578_v53 = vcombine.high %v556_v45, %v556_v45 }
 0x12e   :  { %1261 = vst.msk [vmem:[%s2764_s2 + $0xda] sm:$0x1] %vm1151_vm1, %v920_v54  ;;  %1262 = vst.msk [vmem:[%s2764_s2 + $0xdc] sm:$0x1] %vm1151_vm1, %v922_v55 }
 0x12f   :  { %1389 = vst.msk [vmem:[%s2764_s2 + $0xdb] sm:$0x1] %vm1151_vm1, %v920_v54  ;;  %1390 = vst.msk [vmem:[%s2764_s2 + $0xdd] sm:$0x1] %vm1151_vm1, %v922_v55  ;;  %v941_v54 = vcombine.high %v939_v47, %v939_v47  ;;  %v948_v55 = vrot.slane %v932_v46, %v1567_v24 }
 0x130   :  { %1185 = vst.msk [vmem:[%s2764_s2 + $0x42] sm:$0x1] %vm1151_vm1, %v472_v57  ;;  %1188 = vst.msk [vmem:[%s2764_s2 + $0x48] sm:$0x1] %vm1151_vm1, %v465_v56 }
 0x131   :  { %1313 = vst.msk [vmem:[%s2764_s2 + $0x43] sm:$0x1] %vm1151_vm1, %v472_v57  ;;  %1316 = vst.msk [vmem:[%s2764_s2 + $0x49] sm:$0x1] %vm1151_vm1, %v465_v56  ;;  %v955_v56 = vrot.slane %v939_v47, %v1567_v24  ;;  %v577_v57 = vrot.slane %v549_v48, %v1567_v24  ;;  %v969_v51 = vrot.slane %v941_v54, %v1567_v24 }
 0x132   :  { %1259 = vst.msk [vmem:[%s2764_s2 + $0xd6] sm:$0x1] %vm1151_vm1, %v923_v58  ;;  %1387 = vst.msk [vmem:[%s2764_s2 + $0xd7] sm:$0x1] %vm1151_vm1, %v923_v58  ;;  %v579_v58 = vcombine.high %v563_v49, %v563_v49 }
 0x133   :  { %1186 = vst.msk [vmem:[%s2764_s2 + $0x44] sm:$0x1] %vm1151_vm1, %v480_v60  ;;  %1189 = vst.msk [vmem:[%s2764_s2 + $0x4a] sm:$0x1] %vm1151_vm1, %v479_v59  ;;  %v973_v63 = vcombine.high %v969_v51, %v969_v51 }
 0x134   :  { %1314 = vst.msk [vmem:[%s2764_s2 + $0x45] sm:$0x1] %vm1151_vm1, %v480_v60  ;;  %1317 = vst.msk [vmem:[%s2764_s2 + $0x4b] sm:$0x1] %vm1151_vm1, %v479_v59  ;;  %v580_v59 = vcombine.high %v570_v50, %v570_v50  ;;  %v962_v60 = vrot.slane %v940_v29, %v1567_v24  ;;  %v581_v24 = vcombine.high %v577_v57, %v577_v57 }
 0x135   :  { %1263 = vst.msk [vmem:[%s2764_s2 + $0xde] sm:$0x1] %vm1151_vm1, %v924_v61  ;;  %1391 = vst.msk [vmem:[%s2764_s2 + $0xdf] sm:$0x1] %vm1151_vm1, %v924_v61  ;;  %v970_v61 = vcombine.high %v948_v55, %v948_v55 }
 0x136   :  { %1187 = vst.msk [vmem:[%s2764_s2 + $0x46] sm:$0x1] %vm1151_vm1, %v482_v52  ;;  %1190 = vst.msk [vmem:[%s2764_s2 + $0x4c] sm:$0x1] %vm1151_vm1, %v481_v62 }
 0x137   :  { %1315 = vst.msk [vmem:[%s2764_s2 + $0x47] sm:$0x1] %vm1151_vm1, %v482_v52  ;;  %1318 = vst.msk [vmem:[%s2764_s2 + $0x4d] sm:$0x1] %vm1151_vm1, %v481_v62  ;;  %v971_v62 = vcombine.high %v955_v56, %v955_v56  ;;  %v972_v52 = vcombine.high %v962_v60, %v962_v60 }
 0x138   :  { %1191 = vst.msk [vmem:[%s2764_s2 + $0x4e] sm:$0x1] %vm1151_vm1, %v483_v0  ;;  %1319 = vst.msk [vmem:[%s2764_s2 + $0x4f] sm:$0x1] %vm1151_vm1, %v483_v0 }
 0x139   :  { %1248 = vst.msk [vmem:[%s2764_s2 + $0xc0] sm:$0x1] %vm1151_vm1, %v850_v5  ;;  %1376 = vst.msk [vmem:[%s2764_s2 + $0xc1] sm:$0x1] %vm1151_vm1, %v850_v5 }
 0x13a   :  { %1252 = vst.msk [vmem:[%s2764_s2 + $0xc8] sm:$0x1] %vm1151_vm1, %v857_v11  ;;  %1380 = vst.msk [vmem:[%s2764_s2 + $0xc9] sm:$0x1] %vm1151_vm1, %v857_v11 }
 0x13b   :  { %1249 = vst.msk [vmem:[%s2764_s2 + $0xc2] sm:$0x1] %vm1151_vm1, %v864_v13  ;;  %1250 = vst.msk [vmem:[%s2764_s2 + $0xc4] sm:$0x1] %vm1151_vm1, %v872_v14 }
 0x13c   :  { %1377 = vst.msk [vmem:[%s2764_s2 + $0xc3] sm:$0x1] %vm1151_vm1, %v864_v13  ;;  %1378 = vst.msk [vmem:[%s2764_s2 + $0xc5] sm:$0x1] %vm1151_vm1, %v872_v14 }
 0x13d   :  { %1208 = vst.msk [vmem:[%s2764_s2 + $0x70] sm:$0x1] %vm1151_vm1, %v605_v22  ;;  %1336 = vst.msk [vmem:[%s2764_s2 + $0x71] sm:$0x1] %vm1151_vm1, %v605_v22 }
 0x13e   :  { %1253 = vst.msk [vmem:[%s2764_s2 + $0xca] sm:$0x1] %vm1151_vm1, %v871_v16  ;;  %1254 = vst.msk [vmem:[%s2764_s2 + $0xcc] sm:$0x1] %vm1151_vm1, %v873_v17 }
 0x13f   :  { %1381 = vst.msk [vmem:[%s2764_s2 + $0xcb] sm:$0x1] %vm1151_vm1, %v871_v16  ;;  %1382 = vst.msk [vmem:[%s2764_s2 + $0xcd] sm:$0x1] %vm1151_vm1, %v873_v17 }
 0x140   :  { %1212 = vst.msk [vmem:[%s2764_s2 + $0x78] sm:$0x1] %vm1151_vm1, %v612_v19  ;;  %1340 = vst.msk [vmem:[%s2764_s2 + $0x79] sm:$0x1] %vm1151_vm1, %v612_v19 }
 0x141   :  { %1251 = vst.msk [vmem:[%s2764_s2 + $0xc6] sm:$0x1] %vm1151_vm1, %v874_v20  ;;  %1379 = vst.msk [vmem:[%s2764_s2 + $0xc7] sm:$0x1] %vm1151_vm1, %v874_v20 }
 0x142   :  { %1209 = vst.msk [vmem:[%s2764_s2 + $0x72] sm:$0x1] %vm1151_vm1, %v619_v23  ;;  %1210 = vst.msk [vmem:[%s2764_s2 + $0x74] sm:$0x1] %vm1151_vm1, %v627_v25 }
 0x143   :  { %1337 = vst.msk [vmem:[%s2764_s2 + $0x73] sm:$0x1] %vm1151_vm1, %v619_v23  ;;  %1338 = vst.msk [vmem:[%s2764_s2 + $0x75] sm:$0x1] %vm1151_vm1, %v627_v25 }
 0x144   :  { %1255 = vst.msk [vmem:[%s2764_s2 + $0xce] sm:$0x1] %vm1151_vm1, %v875_v27  ;;  %1383 = vst.msk [vmem:[%s2764_s2 + $0xcf] sm:$0x1] %vm1151_vm1, %v875_v27 }
 0x145   :  { %1213 = vst.msk [vmem:[%s2764_s2 + $0x7a] sm:$0x1] %vm1151_vm1, %v626_v30  ;;  %1214 = vst.msk [vmem:[%s2764_s2 + $0x7c] sm:$0x1] %vm1151_vm1, %v628_v31 }
 0x146   :  { %1341 = vst.msk [vmem:[%s2764_s2 + $0x7b] sm:$0x1] %vm1151_vm1, %v626_v30  ;;  %1342 = vst.msk [vmem:[%s2764_s2 + $0x7d] sm:$0x1] %vm1151_vm1, %v628_v31 }
 0x147   :  { %1211 = vst.msk [vmem:[%s2764_s2 + $0x76] sm:$0x1] %vm1151_vm1, %v629_v33  ;;  %1339 = vst.msk [vmem:[%s2764_s2 + $0x77] sm:$0x1] %vm1151_vm1, %v629_v33 }
 0x148   :  { %1272 = vst.msk [vmem:[%s2764_s2 + $0xf0] sm:$0x1] %vm1151_vm1, %v997_v34  ;;  %1273 = vst.msk [vmem:[%s2764_s2 + $0xf2] sm:$0x1] %vm1151_vm1, %v1011_v36 }
 0x149   :  { %1276 = vst.msk [vmem:[%s2764_s2 + $0xf8] sm:$0x1] %vm1151_vm1, %v1004_v35  ;;  %1400 = vst.msk [vmem:[%s2764_s2 + $0xf1] sm:$0x1] %vm1151_vm1, %v997_v34 }
 0x14a   :  { %1401 = vst.msk [vmem:[%s2764_s2 + $0xf3] sm:$0x1] %vm1151_vm1, %v1011_v36  ;;  %1404 = vst.msk [vmem:[%s2764_s2 + $0xf9] sm:$0x1] %vm1151_vm1, %v1004_v35 }
 0x14b   :  { %1215 = vst.msk [vmem:[%s2764_s2 + $0x7e] sm:$0x1] %vm1151_vm1, %v630_v37  ;;  %1343 = vst.msk [vmem:[%s2764_s2 + $0x7f] sm:$0x1] %vm1151_vm1, %v630_v37 }
 0x14c   :  { %1277 = vst.msk [vmem:[%s2764_s2 + $0xfa] sm:$0x1] %vm1151_vm1, %v1018_v38  ;;  %1405 = vst.msk [vmem:[%s2764_s2 + $0xfb] sm:$0x1] %vm1151_vm1, %v1018_v38 }
 0x14d   :  { %1274 = vst.msk [vmem:[%s2764_s2 + $0xf4] sm:$0x1] %vm1151_vm1, %v1019_v40  ;;  %1275 = vst.msk [vmem:[%s2764_s2 + $0xf6] sm:$0x1] %vm1151_vm1, %v1021_v7 }
 0x14e   :  { %1278 = vst.msk [vmem:[%s2764_s2 + $0xfc] sm:$0x1] %vm1151_vm1, %v1020_v41  ;;  %1402 = vst.msk [vmem:[%s2764_s2 + $0xf5] sm:$0x1] %vm1151_vm1, %v1019_v40 }
 0x14f   :  { %1403 = vst.msk [vmem:[%s2764_s2 + $0xf7] sm:$0x1] %vm1151_vm1, %v1021_v7  ;;  %1406 = vst.msk [vmem:[%s2764_s2 + $0xfd] sm:$0x1] %vm1151_vm1, %v1020_v41 }
 0x150   :  { %1279 = vst.msk [vmem:[%s2764_s2 + $0xfe] sm:$0x1] %vm1151_vm1, %v1022_v42  ;;  %1407 = vst.msk [vmem:[%s2764_s2 + $0xff] sm:$0x1] %vm1151_vm1, %v1022_v42 }
 0x151   :  { %1200 = vst.msk [vmem:[%s2764_s2 + $0x60] sm:$0x1] %vm1151_vm1, %v556_v45  ;;  %1328 = vst.msk [vmem:[%s2764_s2 + $0x61] sm:$0x1] %vm1151_vm1, %v556_v45 }
 0x152   :  { %1201 = vst.msk [vmem:[%s2764_s2 + $0x62] sm:$0x1] %vm1151_vm1, %v570_v50  ;;  %1202 = vst.msk [vmem:[%s2764_s2 + $0x64] sm:$0x1] %vm1151_vm1, %v578_v53 }
 0x153   :  { %1204 = vst.msk [vmem:[%s2764_s2 + $0x68] sm:$0x1] %vm1151_vm1, %v563_v49  ;;  %1329 = vst.msk [vmem:[%s2764_s2 + $0x63] sm:$0x1] %vm1151_vm1, %v570_v50 }
 0x154   :  { %1330 = vst.msk [vmem:[%s2764_s2 + $0x65] sm:$0x1] %vm1151_vm1, %v578_v53  ;;  %1332 = vst.msk [vmem:[%s2764_s2 + $0x69] sm:$0x1] %vm1151_vm1, %v563_v49 }
 0x155   :  { %1264 = vst.msk [vmem:[%s2764_s2 + $0xe0] sm:$0x1] %vm1151_vm1, %v948_v55  ;;  %1268 = vst.msk [vmem:[%s2764_s2 + $0xe8] sm:$0x1] %vm1151_vm1, %v955_v56 }
 0x156   :  { %1392 = vst.msk [vmem:[%s2764_s2 + $0xe1] sm:$0x1] %vm1151_vm1, %v948_v55  ;;  %1396 = vst.msk [vmem:[%s2764_s2 + $0xe9] sm:$0x1] %vm1151_vm1, %v955_v56 }
 0x157   :  { %1203 = vst.msk [vmem:[%s2764_s2 + $0x66] sm:$0x1] %vm1151_vm1, %v580_v59  ;;  %1205 = vst.msk [vmem:[%s2764_s2 + $0x6a] sm:$0x1] %vm1151_vm1, %v577_v57 }
 0x158   :  { %1206 = vst.msk [vmem:[%s2764_s2 + $0x6c] sm:$0x1] %vm1151_vm1, %v579_v58  ;;  %1331 = vst.msk [vmem:[%s2764_s2 + $0x67] sm:$0x1] %vm1151_vm1, %v580_v59 }
 0x159   :  { %1333 = vst.msk [vmem:[%s2764_s2 + $0x6b] sm:$0x1] %vm1151_vm1, %v577_v57  ;;  %1334 = vst.msk [vmem:[%s2764_s2 + $0x6d] sm:$0x1] %vm1151_vm1, %v579_v58 }
 0x15a   :  { %1265 = vst.msk [vmem:[%s2764_s2 + $0xe2] sm:$0x1] %vm1151_vm1, %v962_v60  ;;  %1266 = vst.msk [vmem:[%s2764_s2 + $0xe4] sm:$0x1] %vm1151_vm1, %v970_v61 }
 0x15b   :  { %1269 = vst.msk [vmem:[%s2764_s2 + $0xea] sm:$0x1] %vm1151_vm1, %v969_v51  ;;  %1270 = vst.msk [vmem:[%s2764_s2 + $0xec] sm:$0x1] %vm1151_vm1, %v971_v62 }
 0x15c   :  { %1393 = vst.msk [vmem:[%s2764_s2 + $0xe3] sm:$0x1] %vm1151_vm1, %v962_v60  ;;  %1394 = vst.msk [vmem:[%s2764_s2 + $0xe5] sm:$0x1] %vm1151_vm1, %v970_v61 }
 0x15d   :  { %1397 = vst.msk [vmem:[%s2764_s2 + $0xeb] sm:$0x1] %vm1151_vm1, %v969_v51  ;;  %1398 = vst.msk [vmem:[%s2764_s2 + $0xed] sm:$0x1] %vm1151_vm1, %v971_v62 }
 0x15e   :  { %1207 = vst.msk [vmem:[%s2764_s2 + $0x6e] sm:$0x1] %vm1151_vm1, %v581_v24  ;;  %1335 = vst.msk [vmem:[%s2764_s2 + $0x6f] sm:$0x1] %vm1151_vm1, %v581_v24 }
 0x15f   :  { %1267 = vst.msk [vmem:[%s2764_s2 + $0xe6] sm:$0x1] %vm1151_vm1, %v972_v52  ;;  %1271 = vst.msk [vmem:[%s2764_s2 + $0xee] sm:$0x1] %vm1151_vm1, %v973_v63 }
 0x160   :  { %1395 = vst.msk [vmem:[%s2764_s2 + $0xe7] sm:$0x1] %vm1151_vm1, %v972_v52  ;;  %1399 = vst.msk [vmem:[%s2764_s2 + $0xef] sm:$0x1] %vm1151_vm1, %v973_v63 }

</bundles_post_ra>
